<compile_context>
chip_gen: v7x
topology: tpu7x:2x2x1
jax: 0.10.0
libtpu: 0.0.40
codegen_flags: <defaults>
</compile_context>

<pallas_src>
import functools

import jax
import jax.numpy as jnp
from jax.experimental import pallas as pl
from jax.experimental.pallas import tpu as pltpu


def _head_exp_bboxes_kernel(x_ref, w_ref, b_ref, o_ref):
    # x_ref: (C, tl)  f32 VMEM  — one spatial tile of one image, channel-major
    # w_ref: (4, C)   f32 SMEM  — 1x1 conv weight (scalars)
    # b_ref: (4,)     f32 SMEM  — bias (scalars)
    # o_ref: (4, tl)  f32 VMEM  — lane-dense output tile
    n_out, c_in = w_ref.shape

    # Load each input-channel row once; each row is a lane-dense (1, tl) slab.
    xc = [x_ref[c:c + 1, :] for c in range(c_in)]

    # out[o, :] = exp(sum_c w[o, c] * x[c, :] + b[o])  — pure VPU FMAs + EUP exp.
    for o in range(n_out):
        acc = xc[0] * w_ref[o, 0]
        for c in range(1, c_in):
            acc = acc + xc[c] * w_ref[o, c]
        o_ref[o:o + 1, :] = jnp.exp(acc + b_ref[o]).astype(o_ref.dtype)


@functools.partial(jax.jit, static_argnames=("tl_max",))
def head_exp_bboxes(x, w, b, *, tl_max=8192):
    """x: (N, C, H, W) float32.  w: (4, C) conv weight (k=1 squeezed).  b: (4,)."""
    N, C, H, W = x.shape
    HW = H * W
    xr = x.reshape(N, C, HW)          # free reshape: NCHW is already row-major

    # Spatial (lane) tile: full extent if it fits, else a big 128-aligned tile.
    # tl_max is a multiple of 128; ragged tails are handled by Pallas block
    # boundary masking (no wrapper padding pass needed).
    tl = HW if HW <= tl_max else tl_max
    n_sp = pl.cdiv(HW, tl)

    out = pl.pallas_call(
        _head_exp_bboxes_kernel,
        out_shape=jax.ShapeDtypeStruct((N, 4, HW), x.dtype),
        grid_spec=pltpu.PrefetchScalarGridSpec(
            num_scalar_prefetch=0,
            grid=(N, n_sp),
            in_specs=[
                # (C, tl) channel-major activation tile (batch dim squeezed).
                pl.BlockSpec((None, C, tl), lambda n, s: (n, 0, s)),
                # Weight + bias as SMEM scalars (no per-step vector DMA).
                pl.BlockSpec(memory_space=pltpu.MemorySpace.SMEM),
                pl.BlockSpec(memory_space=pltpu.MemorySpace.SMEM),
            ],
            out_specs=pl.BlockSpec((None, 4, tl), lambda n, s: (n, 0, s)),
        ),
        compiler_params=pltpu.CompilerParams(
            dimension_semantics=("parallel", "parallel")),
        # VMEM use is tiny (< 1 MiB double-buffered) — default scoped VMEM is
        # plenty on v5e/v6e/v7x, so no vmem_limit_bytes override is needed.
    )(xr, w, b)

    return out.reshape(N, 4, H, W)    # free reshape back to NCHW


if __name__ == "__main__":
    key = jax.random.PRNGKey(0)
    k_x, k_w, k_b = jax.random.split(key, 3)

    N, C_in, H, W = 2, 4, 16, 16
    x = jax.random.normal(k_x, (N, C_in, H, W), dtype=jnp.float32)

    # Deterministic parameter init mimicking nn.Conv2d default (uniform +-1/sqrt(fan_in)).
    fan_in = C_in * 1 * 1
    bound = 1.0 / (fan_in ** 0.5)
    w = jax.random.uniform(k_w, (4, C_in), minval=-bound, maxval=bound,
                           dtype=jnp.float32)   # conv weight (4, C_in, 1, 1) squeezed
    b = jax.random.uniform(k_b, (4,), minval=-bound, maxval=bound, dtype=jnp.float32)

    out = head_exp_bboxes(x, w, b)
    out = jax.block_until_ready(out)

    # Pure-JAX reference (1x1 conv == channel matmul) + exp.
    ref = jnp.exp(jnp.einsum("nchw,oc->nohw", x, w) + b[None, :, None, None])
    assert out.shape == (N, 4, H, W)
    assert jnp.allclose(out, ref, atol=1e-5, rtol=1e-5)

    print("KERNEL_OK")
</pallas_src>

<mosaic_0001>
module attributes {stable_mosaic.version = 11 : i64} {
  func.func @_head_exp_bboxes_kernel(%arg0: i32, %arg1: i32, %arg2: memref<1x4x256xf32, #tpu.memory_space<vmem>>, %arg3: memref<4x4xf32, #tpu.memory_space<smem>>, %arg4: memref<4xf32, #tpu.memory_space<smem>>, %arg5: memref<1x4x256xf32, #tpu.memory_space<vmem>>) attributes {dimension_semantics = [#tpu.dimension_semantics<parallel>, #tpu.dimension_semantics<parallel>], iteration_bounds = array<i64: 2, 1>, scalar_prefetch = 0 : i64, scratch_operands = 0 : i64, tpu.core_type = #tpu.core_type<tc>, window_params = [{transform_indices = @transform_0, window_bounds = array<i64: 1, 4, 256>}, {transform_indices = @transform_1, window_bounds = array<i64: 4, 4>}, {transform_indices = @transform_2, window_bounds = array<i64: 4>}, {transform_indices = @transform_3, window_bounds = array<i64: 1, 4, 256>}]} {
    %c0 = arith.constant 0 : index
    %c0_0 = arith.constant 0 : index
    %c0_1 = arith.constant 0 : index
    %0 = vector.load %arg2[%c0, %c0_0, %c0_1] : memref<1x4x256xf32, #tpu.memory_space<vmem>>, vector<1x1x256xf32>
    %1 = vector.shape_cast %0 : vector<1x1x256xf32> to vector<1x256xf32>
    %c0_2 = arith.constant 0 : index
    %c1 = arith.constant 1 : index
    %c0_3 = arith.constant 0 : index
    %2 = vector.load %arg2[%c0_2, %c1, %c0_3] : memref<1x4x256xf32, #tpu.memory_space<vmem>>, vector<1x1x256xf32>
    %3 = vector.shape_cast %2 : vector<1x1x256xf32> to vector<1x256xf32>
    %c0_4 = arith.constant 0 : index
    %c2 = arith.constant 2 : index
    %c0_5 = arith.constant 0 : index
    %4 = vector.load %arg2[%c0_4, %c2, %c0_5] : memref<1x4x256xf32, #tpu.memory_space<vmem>>, vector<1x1x256xf32>
    %5 = vector.shape_cast %4 : vector<1x1x256xf32> to vector<1x256xf32>
    %c0_6 = arith.constant 0 : index
    %c3 = arith.constant 3 : index
    %c0_7 = arith.constant 0 : index
    %6 = vector.load %arg2[%c0_6, %c3, %c0_7] : memref<1x4x256xf32, #tpu.memory_space<vmem>>, vector<1x1x256xf32>
    %7 = vector.shape_cast %6 : vector<1x1x256xf32> to vector<1x256xf32>
    %c0_8 = arith.constant 0 : index
    %c0_9 = arith.constant 0 : index
    %8 = memref.load %arg3[%c0_8, %c0_9] : memref<4x4xf32, #tpu.memory_space<smem>>
    %9 = vector.broadcast %8 : f32 to vector<1x256xf32>
    %10 = arith.mulf %1, %9 : vector<1x256xf32>
    %c0_10 = arith.constant 0 : index
    %c1_11 = arith.constant 1 : index
    %11 = memref.load %arg3[%c0_10, %c1_11] : memref<4x4xf32, #tpu.memory_space<smem>>
    %12 = vector.broadcast %11 : f32 to vector<1x256xf32>
    %13 = arith.mulf %3, %12 : vector<1x256xf32>
    %14 = arith.addf %10, %13 : vector<1x256xf32>
    %c0_12 = arith.constant 0 : index
    %c2_13 = arith.constant 2 : index
    %15 = memref.load %arg3[%c0_12, %c2_13] : memref<4x4xf32, #tpu.memory_space<smem>>
    %16 = vector.broadcast %15 : f32 to vector<1x256xf32>
    %17 = arith.mulf %5, %16 : vector<1x256xf32>
    %18 = arith.addf %14, %17 : vector<1x256xf32>
    %c0_14 = arith.constant 0 : index
    %c3_15 = arith.constant 3 : index
    %19 = memref.load %arg3[%c0_14, %c3_15] : memref<4x4xf32, #tpu.memory_space<smem>>
    %20 = vector.broadcast %19 : f32 to vector<1x256xf32>
    %21 = arith.mulf %7, %20 : vector<1x256xf32>
    %22 = arith.addf %18, %21 : vector<1x256xf32>
    %c0_16 = arith.constant 0 : index
    %23 = memref.load %arg4[%c0_16] : memref<4xf32, #tpu.memory_space<smem>>
    %24 = vector.broadcast %23 : f32 to vector<1x256xf32>
    %25 = arith.addf %22, %24 : vector<1x256xf32>
    %26 = math.exp %25 : vector<1x256xf32>
    %c0_17 = arith.constant 0 : index
    %c0_18 = arith.constant 0 : index
    %c0_19 = arith.constant 0 : index
    %27 = vector.load %arg5[%c0_17, %c0_18, %c0_19] : memref<1x4x256xf32, #tpu.memory_space<vmem>>, vector<1x1x256xf32>
    %28 = vector.shape_cast %27 : vector<1x1x256xf32> to vector<1x256xf32>
    %29 = vector.shape_cast %26 : vector<1x256xf32> to vector<1x1x256xf32>
    tpu.vector_store %arg5[%c0_17, %c0_18, %c0_19], %29 {strides = array<i32>} : memref<1x4x256xf32, #tpu.memory_space<vmem>>, vector<1x1x256xf32>,
    %c1_20 = arith.constant 1 : index
    %c0_21 = arith.constant 0 : index
    %30 = memref.load %arg3[%c1_20, %c0_21] : memref<4x4xf32, #tpu.memory_space<smem>>
    %31 = vector.broadcast %30 : f32 to vector<1x256xf32>
    %32 = arith.mulf %1, %31 : vector<1x256xf32>
    %c1_22 = arith.constant 1 : index
    %c1_23 = arith.constant 1 : index
    %33 = memref.load %arg3[%c1_22, %c1_23] : memref<4x4xf32, #tpu.memory_space<smem>>
    %34 = vector.broadcast %33 : f32 to vector<1x256xf32>
    %35 = arith.mulf %3, %34 : vector<1x256xf32>
    %36 = arith.addf %32, %35 : vector<1x256xf32>
    %c1_24 = arith.constant 1 : index
    %c2_25 = arith.constant 2 : index
    %37 = memref.load %arg3[%c1_24, %c2_25] : memref<4x4xf32, #tpu.memory_space<smem>>
    %38 = vector.broadcast %37 : f32 to vector<1x256xf32>
    %39 = arith.mulf %5, %38 : vector<1x256xf32>
    %40 = arith.addf %36, %39 : vector<1x256xf32>
    %c1_26 = arith.constant 1 : index
    %c3_27 = arith.constant 3 : index
    %41 = memref.load %arg3[%c1_26, %c3_27] : memref<4x4xf32, #tpu.memory_space<smem>>
    %42 = vector.broadcast %41 : f32 to vector<1x256xf32>
    %43 = arith.mulf %7, %42 : vector<1x256xf32>
    %44 = arith.addf %40, %43 : vector<1x256xf32>
    %c1_28 = arith.constant 1 : index
    %45 = memref.load %arg4[%c1_28] : memref<4xf32, #tpu.memory_space<smem>>
    %46 = vector.broadcast %45 : f32 to vector<1x256xf32>
    %47 = arith.addf %44, %46 : vector<1x256xf32>
    %48 = math.exp %47 : vector<1x256xf32>
    %c0_29 = arith.constant 0 : index
    %c1_30 = arith.constant 1 : index
    %c0_31 = arith.constant 0 : index
    %49 = vector.load %arg5[%c0_29, %c1_30, %c0_31] : memref<1x4x256xf32, #tpu.memory_space<vmem>>, vector<1x1x256xf32>
    %50 = vector.shape_cast %49 : vector<1x1x256xf32> to vector<1x256xf32>
    %51 = vector.shape_cast %48 : vector<1x256xf32> to vector<1x1x256xf32>
    tpu.vector_store %arg5[%c0_29, %c1_30, %c0_31], %51 {strides = array<i32>} : memref<1x4x256xf32, #tpu.memory_space<vmem>>, vector<1x1x256xf32>,
    %c2_32 = arith.constant 2 : index
    %c0_33 = arith.constant 0 : index
    %52 = memref.load %arg3[%c2_32, %c0_33] : memref<4x4xf32, #tpu.memory_space<smem>>
    %53 = vector.broadcast %52 : f32 to vector<1x256xf32>
    %54 = arith.mulf %1, %53 : vector<1x256xf32>
    %c2_34 = arith.constant 2 : index
    %c1_35 = arith.constant 1 : index
    %55 = memref.load %arg3[%c2_34, %c1_35] : memref<4x4xf32, #tpu.memory_space<smem>>
    %56 = vector.broadcast %55 : f32 to vector<1x256xf32>
    %57 = arith.mulf %3, %56 : vector<1x256xf32>
    %58 = arith.addf %54, %57 : vector<1x256xf32>
    %c2_36 = arith.constant 2 : index
    %c2_37 = arith.constant 2 : index
    %59 = memref.load %arg3[%c2_36, %c2_37] : memref<4x4xf32, #tpu.memory_space<smem>>
    %60 = vector.broadcast %59 : f32 to vector<1x256xf32>
    %61 = arith.mulf %5, %60 : vector<1x256xf32>
    %62 = arith.addf %58, %61 : vector<1x256xf32>
    %c2_38 = arith.constant 2 : index
    %c3_39 = arith.constant 3 : index
    %63 = memref.load %arg3[%c2_38, %c3_39] : memref<4x4xf32, #tpu.memory_space<smem>>
    %64 = vector.broadcast %63 : f32 to vector<1x256xf32>
    %65 = arith.mulf %7, %64 : vector<1x256xf32>
    %66 = arith.addf %62, %65 : vector<1x256xf32>
    %c2_40 = arith.constant 2 : index
    %67 = memref.load %arg4[%c2_40] : memref<4xf32, #tpu.memory_space<smem>>
    %68 = vector.broadcast %67 : f32 to vector<1x256xf32>
    %69 = arith.addf %66, %68 : vector<1x256xf32>
    %70 = math.exp %69 : vector<1x256xf32>
    %c0_41 = arith.constant 0 : index
    %c2_42 = arith.constant 2 : index
    %c0_43 = arith.constant 0 : index
    %71 = vector.load %arg5[%c0_41, %c2_42, %c0_43] : memref<1x4x256xf32, #tpu.memory_space<vmem>>, vector<1x1x256xf32>
    %72 = vector.shape_cast %71 : vector<1x1x256xf32> to vector<1x256xf32>
    %73 = vector.shape_cast %70 : vector<1x256xf32> to vector<1x1x256xf32>
    tpu.vector_store %arg5[%c0_41, %c2_42, %c0_43], %73 {strides = array<i32>} : memref<1x4x256xf32, #tpu.memory_space<vmem>>, vector<1x1x256xf32>,
    %c3_44 = arith.constant 3 : index
    %c0_45 = arith.constant 0 : index
    %74 = memref.load %arg3[%c3_44, %c0_45] : memref<4x4xf32, #tpu.memory_space<smem>>
    %75 = vector.broadcast %74 : f32 to vector<1x256xf32>
    %76 = arith.mulf %1, %75 : vector<1x256xf32>
    %c3_46 = arith.constant 3 : index
    %c1_47 = arith.constant 1 : index
    %77 = memref.load %arg3[%c3_46, %c1_47] : memref<4x4xf32, #tpu.memory_space<smem>>
    %78 = vector.broadcast %77 : f32 to vector<1x256xf32>
    %79 = arith.mulf %3, %78 : vector<1x256xf32>
    %80 = arith.addf %76, %79 : vector<1x256xf32>
    %c3_48 = arith.constant 3 : index
    %c2_49 = arith.constant 2 : index
    %81 = memref.load %arg3[%c3_48, %c2_49] : memref<4x4xf32, #tpu.memory_space<smem>>
    %82 = vector.broadcast %81 : f32 to vector<1x256xf32>
    %83 = arith.mulf %5, %82 : vector<1x256xf32>
    %84 = arith.addf %80, %83 : vector<1x256xf32>
    %c3_50 = arith.constant 3 : index
    %c3_51 = arith.constant 3 : index
    %85 = memref.load %arg3[%c3_50, %c3_51] : memref<4x4xf32, #tpu.memory_space<smem>>
    %86 = vector.broadcast %85 : f32 to vector<1x256xf32>
    %87 = arith.mulf %7, %86 : vector<1x256xf32>
    %88 = arith.addf %84, %87 : vector<1x256xf32>
    %c3_52 = arith.constant 3 : index
    %89 = memref.load %arg4[%c3_52] : memref<4xf32, #tpu.memory_space<smem>>
    %90 = vector.broadcast %89 : f32 to vector<1x256xf32>
    %91 = arith.addf %88, %90 : vector<1x256xf32>
    %92 = math.exp %91 : vector<1x256xf32>
    %c0_53 = arith.constant 0 : index
    %c3_54 = arith.constant 3 : index
    %c0_55 = arith.constant 0 : index
    %93 = vector.load %arg5[%c0_53, %c3_54, %c0_55] : memref<1x4x256xf32, #tpu.memory_space<vmem>>, vector<1x1x256xf32>
    %94 = vector.shape_cast %93 : vector<1x1x256xf32> to vector<1x256xf32>
    %95 = vector.shape_cast %92 : vector<1x256xf32> to vector<1x1x256xf32>
    tpu.vector_store %arg5[%c0_53, %c3_54, %c0_55], %95 {strides = array<i32>} : memref<1x4x256xf32, #tpu.memory_space<vmem>>, vector<1x1x256xf32>,
    return
  }
  func.func @transform_0(%arg0: i32, %arg1: i32) -> (i32, i32, i32) {
    %c0_i32 = arith.constant 0 : i32
    %c0_i32_0 = arith.constant 0 : i32
    return %arg0, %c0_i32, %arg1 : i32, i32, i32
  }
  func.func @transform_1(%arg0: i32, %arg1: i32) -> (i32, i32) {
    %c0_i32 = arith.constant 0 : i32
    %c0_i32_0 = arith.constant 0 : i32
    %c0_i32_1 = arith.constant 0 : i32
    return %c0_i32, %c0_i32_0 : i32, i32
  }
  func.func @transform_2(%arg0: i32, %arg1: i32) -> i32 {
    %c0_i32 = arith.constant 0 : i32
    %c0_i32_0 = arith.constant 0 : i32
    return %c0_i32 : i32
  }
  func.func @transform_3(%arg0: i32, %arg1: i32) -> (i32, i32, i32) {
    %c0_i32 = arith.constant 0 : i32
    %c0_i32_0 = arith.constant 0 : i32
    return %arg0, %c0_i32, %arg1 : i32, i32, i32
  }
}

</mosaic_0001>

<bundles_post_ra>
// kernel: head_exp_bboxes.1
= control target key start
LH: loop header
LB: loop body
LE: loop exit
PB: predicated region body
PF: predicated region fallthrough
CT: control target
= control target key end

     0   :  { %8 = vsyncpa [#allocation3], 0  ;;  %s726_s0 = inlined_call_operand.vmem [shape: f32[2,4,256], index: 0, kind: input, shape index: {}]   ;;  %s727_s1 = inlined_call_operand.vmem [shape: f32[4,4], index: 1, kind: input, shape index: {}]   ;;  %s728_s2 = inlined_call_operand.vmem [shape: f32[4], index: 2, kind: input, shape index: {}]   ;;  %s729_s3 = inlined_call_operand.vmem [shape: f32[2,4,256], index: 3, kind: output, shape index: {}]  }
   0x1   :  { %9 = vsyncpa [#allocation5], 0  ;;  %s622_s12 = smov 0   ;;  %s624_s13 = smov 0  }
   0x2   :  { %s626_s14 = smov 0  }
   0x3 LB: > { %s444_s15 = sadd.s32 4294967295, %s598_s14   ;;  %s27_s16 = sadd.s32 1, %s594_s13  ;;  %s598_s14 = sphi %s626_s14, %s15_s14   ;;  %s594_s13 = sphi %s624_s13, %s739_s13   ;;  %s590_s12 = sphi %s622_s12, %s738_s12  }
   0x4   : > { %p29_p0 = scmp.ge.s32.totalorder %s27_s16, 2  ;;  %p446_p1 = scmp.ge.s32.totalorder %s598_s14, 1 }
   0x5   : > { %p130_p2 = scmp.lt.s32.totalorder %s598_s14, 3  ;;  %p647_p4 = scmp.eq.s32.totalorder %s444_s15, 0 }
   0x6   : > { %s741_s16 = smov (%p29_p0, %s27_s16), 0  ;;  %s143_s21 = sshll.u32 %s727_s1, 4  ;;  %s144_s21 = int_to_ptr.vmem [resolvable:$true] %s143_s21 }
   0x7   : > { %p643_p3 = pnand %p446_p1, %p130_p2  ;;  %s154_s24 = sshll.u32 %s728_s2, 4  ;;  %s155_s24 = int_to_ptr.vmem [resolvable:$true] %s154_s24 }
   0x8   : > { %s734_s18 = scalar_select %p647_p4, 1, 0 }
   0x9   : > { %s733_s17 = scalar_select %p643_p3, 1, 0 }
   0xa   : > { %p493_p5 = pneg %p643_p3  ;;  %s538_s26 = scalar_lea.vmem %s144_s21, 64 }
   0xb   : > { %p539_p7 = scmp.ne.s32.totalorder %s144_s21, %s538_s26  ;;  %p546_p11 = scmp.lt.s32.totalorder %s144_s21, %s144_s21 }
   0xc   : > { %p661_p6 = pnand %p647_p4, %p493_p5  ;;  %p547_p12 = scmp.lt.s32.totalorder %s538_s26, %s538_s26 }
   0xe   : > { %p540_p8 = pneg %p661_p6  ;;  %p548_p13 = por %p547_p12, %p546_p11 }
  0x10   : > { %p541_p9 = pnand %p540_p8, %p539_p7 }
  0x12   : > { %p542_p10 = pneg %p541_p9 }
  0x14   : > { %p549_p0 = pnand %p548_p13, %p542_p10 }
  0x16   : > { %552 = shalt.err (!%p549_p0)
}
  0x17   : > { %s600_s27 = smov [#allocation2]   ;;  %s553_s28 = scalar_lea.vmem %s155_s24, 16 }
  0x18   : > { %496 = dma.vmem_to_smem (!%p661_p6), %s144_s21, 64, %s600_s27, [#allocation3]  }
  0x19   : > { %p554_p1 = scmp.ne.s32.totalorder %s155_s24, %s553_s28  ;;  %p561_p4 = scmp.lt.s32.totalorder %s155_s24, %s155_s24 }
  0x1a   : > { %p562_p3 = scmp.lt.s32.totalorder %s553_s28, %s553_s28 }
  0x1b   : > { %p556_p2 = pnand %p554_p1, %p540_p8 }
  0x1c   : > { %p563_p7 = por %p562_p3, %p561_p4 }
  0x1d   : > { %p557_p5 = pneg %p556_p2 }
  0x1f   : > { %p564_p9 = pnand %p563_p7, %p557_p5 }
  0x21   : > { %567 = shalt.err (!%p564_p9)
}
  0x22   : > { %s601_s29 = smov [#allocation4]   ;;  %p736_p10 = scmp.ne.s32.totalorder %s733_s17, 0 }
  0x23   : > { %499 = dma.vmem_to_smem (!%p661_p6), %s155_s24, 16, %s601_s29, [#allocation5]  }
  0x24   : > { %180 = sbr.rel (%p736_p10) target bundleno = 91 (0x5b), region = 32  ;;  %p737_p11 = scmp.ne.s32.totalorder (!%p736_p10), %s734_s18, 0 }
  0x2b   : > { %581 = dma.done.wait (%p737_p11), [#allocation3], 64  }
  0x2c   : > { %583 = vsyncadd (%p737_p11), [#allocation3], 4294967232 }
  0x2d   : > { %585 = dma.done.wait (%p737_p11), [#allocation5], 16  }
  0x2e   : > { %587 = vsyncadd (%p737_p11), [#allocation5], 4294967280 }
  0x2f   : > { %190 = sfence }
  0x30   : > { %p218_p3 = scmp.lt.s32.totalorder %s590_s12, 1  ;;  %s244_s30 = sld [smem:[#allocation2]]  ;;  %v264_v52 = vlaneseq }
  0x31   : > { %s460_s4 = sld [smem:[#allocation2 + $0x1]]  ;;  %s461_s5 = sld [smem:[#allocation2 + $0x2]] }
  0x32   : > { %s743_s12 = smov (!%p218_p3, %s590_s12), 1  ;;  %s462_s6 = sld [smem:[#allocation2 + $0x3]]  ;;  %vm266_vm0 = vcmp.lt.s32.totalorder %v264_v52, 256 }
  0x33   : > { %s483_s7 = sshll.u32 %s743_s12, 3  ;;  %s463_s8 = sld [smem:[#allocation2 + $0x80]] }
  0x34   : > { %s225_s11 = scalar_lea.vmem %s726_s0, %s483_s7  ;;  %s691_s15 = sld [smem:[#allocation4]] }
  0x35   : > { %v237_v0 = vld [vmem:[%s225_s11] ss:$4 sm:$0x3]  ;;  %v457_v1 = vld [vmem:[%s225_s11 + $0x1] ss:$4 sm:$0x3] }
  0x36   : > { %v245_v2 = vstv %s244_s30  ;;  %v458_v3 = vld [vmem:[%s225_s11 + $0x2] ss:$4 sm:$0x3]  ;;  %v459_v4 = vld [vmem:[%s225_s11 + $0x3] ss:$4 sm:$0x3] }
  0x37   : > { %v246_v5 = vmul.f32 %v245_v2, %v237_v0  ;;  %v248_v6 = vstv %s460_s4  ;;  %v252_v7 = vstv %s461_s5  ;;  %s464_s17 = sld [smem:[#allocation2 + $0x81]]  ;;  %s465_s18 = sld [smem:[#allocation2 + $0x82]] }
  0x38   : > { %v249_v8 = vmul.f32 %v457_v1, %v248_v6  ;;  %v253_v9 = vmul.f32 %v458_v3, %v252_v7  ;;  %v256_v10 = vstv %s462_s6  ;;  %s466_s19 = sld [smem:[#allocation2 + $0x83]]  ;;  %s693_s20 = sld [smem:[#allocation4 + $0x1]] }
  0x39   : > { %v257_v12 = vmul.f32 %v459_v4, %v256_v10  ;;  %v270_v13 = vstv %s463_s8  ;;  %s469_s21 = sld [smem:[#allocation2 + $0x100]]  ;;  %s470_s22 = sld [smem:[#allocation2 + $0x101]] }
  0x3a   : > { %v250_v11 = vadd.f32 %v249_v8, %v246_v5  ;;  %s471_s23 = sld [smem:[#allocation2 + $0x102]]  ;;  %s472_s24 = sld [smem:[#allocation2 + $0x103]]  ;;  %v260_v15 = vstv %s691_s15  ;;  %v271_v16 = vmul.f32 %v270_v13, %v237_v0 }
  0x3b   : > { %s695_s25 = sld [smem:[#allocation2 + $0x180]]  ;;  %s698_s26 = sld [smem:[#allocation2 + $0x181]] }
  0x3c   : > { %v254_v14 = vadd.f32 %v253_v9, %v250_v11  ;;  %s700_s27 = sld [smem:[#allocation2 + $0x182]]  ;;  %s704_s29 = sld [smem:[#allocation2 + $0x183]] }
  0x3d   : > { %v273_v18 = vstv %s464_s17  ;;  %v277_v19 = vstv %s465_s18  ;;  %s702_s28 = sld [smem:[#allocation4 + $0x2]]  ;;  %s479_s30 = sld [smem:[#allocation4 + $0x3]] }
  0x3e   : > { %v258_v17 = vadd.f32 %v257_v12, %v254_v14  ;;  %v274_v20 = vmul.f32 %v457_v1, %v273_v18  ;;  %v278_v21 = vmul.f32 %v458_v3, %v277_v19  ;;  %v281_v22 = vstv %s466_s19  ;;  %s235_s6 = scalar_lea.vmem %s729_s3, %s483_s7 }
  0x3f   : > { %v282_v24 = vmul.f32 %v459_v4, %v281_v22  ;;  %v292_v25 = vstv %s469_s21  ;;  %v295_v26 = vstv %s470_s22  ;;  %v285_v32 = vstv %s693_s20 }
  0x40   : > { %v261_v23 = vadd.f32 %v260_v15, %v258_v17  ;;  %v275_v27 = vadd.f32 %v274_v20, %v271_v16  ;;  %v293_v28 = vmul.f32 %v292_v25, %v237_v0  ;;  %v296_v29 = vmul.f32 %v457_v1, %v295_v26 }
  0x41   : > { %v299_v30 = vstv %s471_s23  ;;  %v303_v34 = vstv %s472_s24  ;;  %v314_v38 = vstv %s695_s25  ;;  %v317_v40 = vstv %s698_s26 }
  0x42   : > { %v262_v31 = vmul.f32 1.442695, %v261_v23  ;;  %v300_v33 = vmul.f32 %v458_v3, %v299_v30  ;;  %v279_v35 = vadd.f32 %v278_v21, %v275_v27  ;;  %v297_v36 = vadd.f32 %v296_v29, %v293_v28 }
  0x43   : > { %v304_v37 = vmul.f32 %v459_v4, %v303_v34  ;;  %v315_v39 = vmul.f32 %v314_v38, %v237_v0  ;;  %v321_v41 = vstv %s700_s27  ;;  %v318_v44 = vmul.f32 %v457_v1, %v317_v40 }
  0x44   : > { %530 = vpow2.f32 %v262_v31  ;;  %v283_v42 = vadd.f32 %v282_v24, %v279_v35  ;;  %v301_v43 = vadd.f32 %v300_v33, %v297_v36  ;;  %v322_v45 = vmul.f32 %v458_v3, %v321_v41 }
  0x45   : > { %v307_v46 = vstv %s702_s28  ;;  %v325_v47 = vstv %s704_s29  ;;  %v319_v50 = vadd.f32 %v318_v44, %v315_v39  ;;  %v329_v56 = vstv %s479_s30 }
  0x46   : > { %v286_v48 = vadd.f32 %v285_v32, %v283_v42  ;;  %v305_v49 = vadd.f32 %v304_v37, %v301_v43  ;;  %v326_v51 = vmul.f32 %v459_v4, %v325_v47 }
  0x47   : > { %v323_v55 = vadd.f32 %v322_v45, %v319_v50 }
  0x48   : > { %v287_v53 = vmul.f32 1.442695, %v286_v48  ;;  %v308_v54 = vadd.f32 %v307_v46, %v305_v49 }
  0x49   : > { %v327_v58 = vadd.f32 %v326_v51, %v323_v55 }
  0x4a   : > { %532 = vpow2.f32 %v287_v53  ;;  %v309_v57 = vmul.f32 1.442695, %v308_v54 }
  0x4b   : > { %v330_v59 = vadd.f32 %v329_v56, %v327_v58 }
  0x4c   : > { %534 = vpow2.f32 %v309_v57 }
  0x4d   : > { %v331_v61 = vmul.f32 1.442695, %v330_v59 }
  0x4e   : > { %v531_v60 = vpop.eup %530 }
  0x4f   : > { %268 = vst.msk [vmem:[%s235_s6] ss:$4 sm:$0x3] %vm266_vm0, %v531_v60  ;;  %536 = vpow2.f32 %v331_v61 }
  0x54   : > { %v533_v62 = vpop.eup %532 }
  0x55   : > { %468 = vst.msk [vmem:[%s235_s6 + $0x1] ss:$4 sm:$0x3] %vm266_vm0, %v533_v62 }
  0x56   : > { %v535_v63 = vpop.eup %534 }
  0x57   : > { %474 = vst.msk [vmem:[%s235_s6 + $0x2] ss:$4 sm:$0x3] %vm266_vm0, %v535_v63 }
  0x59   : > { %v537_v0 = vpop.eup %536 }
  0x5a   : > { %480 = vst.msk [vmem:[%s235_s6 + $0x3] ss:$4 sm:$0x3] %vm266_vm0, %v537_v0 }
  0x5b PF: > { %s15_s14 = sadd.s32 1, %s598_s14   ;;  %s738_s12 = smov %s594_s13 }
  0x5c   : > { %p12_p4 = scmp.ge.s32.totalorder %s15_s14, 4   ;;  %s739_s13 = smov %s741_s16 }
  0x5e   :  { %14 = sbr.rel (!%p12_p4) target bundleno = 3 (0x3), region = 77 }
  0x65   :  { %365 = vsyncpa [#allocation3], 1 }
  0x66   :  { %367 = vsyncpa [#allocation3 + $0x1], 1 }
  0x67   :  { %368 = vsyncpa [#allocation5], 1 }

</bundles_post_ra>
